<compile_context>
chip_gen: v5e
topology: v5e:2x2
jax: 0.10.0
libtpu: 0.0.40
codegen_flags: <defaults>
</compile_context>

<pallas_src>
import jax
import jax.numpy as jnp
from jax.experimental import pallas as pl
from jax.experimental.pallas import tpu as pltpu


# --------------------------------------------------------------------------
# Helpers: VMEM budget / tile sizing
# --------------------------------------------------------------------------

def _vmem_budget():
    """Return (tile_budget_bytes, vmem_limit_bytes), generation-aware."""
    cap = 64 * 1024 * 1024  # conservative fallback (v7x-sized)
    try:
        info = pltpu.get_tpu_info()
        cap = int(getattr(info, "vmem_capacity_bytes", cap)) or cap
    except Exception:
        pass
    # Tiles (double-buffered in + out) sized against cap/4; scoped limit cap/2.
    return cap // 4, cap // 2


def _round_up(x, m):
    return ((x + m - 1) // m) * m


def _cap_for_megacore(extent, tile, unit, n_other, min_steps=4):
    """Shrink `tile` (kept a multiple of `unit`) so that the total grid has
    at least `min_steps` steps when possible -> both v7x TensorCores get work."""
    need = -(-min_steps // max(1, n_other))  # spatial steps needed
    if need <= 1:
        return tile
    max_tile = -(-extent // need)
    max_tile = max(unit, (max_tile // unit) * unit)
    return min(tile, max_tile)


def _choose_ts(r, c_in, c_out, budget, dtype_bytes, n_batch):
    """Sublane tile (rows of 128 lanes) for the packed VPU path."""
    if r <= 8:
        return r  # full extent (always legal)
    per_row = 2 * (c_in + c_out) * 128 * dtype_bytes  # double-buffered bytes / row
    ts = max(8, (budget // per_row) // 8 * 8)
    ts = min(ts, 4096)                 # 4096 * 128 lanes = 512K elems / channel / tile
    ts = min(ts, _round_up(r, 8))
    ts = _cap_for_megacore(r, ts, 8, n_batch)
    return max(8, ts)


def _choose_tm(hw, c_in, c_out, budget, dtype_bytes, n_batch):
    """Lane tile for the MXU (lane-dense 3D) path."""
    if hw <= 128:
        return hw  # full extent (always legal)
    per_lane = 2 * (c_in + c_out) * dtype_bytes
    tm = max(128, (budget // per_lane) // 128 * 128)
    tm = min(tm, 128 * 1024)
    tm = min(tm, _round_up(hw, 128))
    tm = _cap_for_megacore(hw, tm, 128, n_batch)
    return max(128, tm)


# --------------------------------------------------------------------------
# Kernels
# --------------------------------------------------------------------------

def _make_packed_vpu_kernel(c_in, c_out):
    """1x1 conv + ReLU via VPU broadcast-FMA on (ts, 128) packed tiles.

    Weights / bias are SMEM scalars; every accumulator is a full vreg-dense
    (ts, 128) block (no sublane waste)."""

    def kernel(w_ref, b_ref, x_ref, o_ref):
        # w_ref: SMEM (c_out, c_in) f32;  b_ref: SMEM (c_out,) f32
        # x_ref: VMEM (c_in, ts, 128);    o_ref: VMEM (c_out, ts, 128)
        x = x_ref[...].astype(jnp.float32)
        for o in range(c_out):
            acc = x[0] * w_ref[o, 0] + b_ref[o]   # bias folded into first FMA
            for c in range(1, c_in):
                acc = acc + x[c] * w_ref[o, c]
            o_ref[o] = jnp.maximum(acc, 0.0).astype(o_ref.dtype)

    return kernel


def _mxu_kernel(w_ref, b_ref, x_ref, o_ref):
    # w_ref: VMEM (C_out, C_in) in x's dtype;  b_ref: VMEM (C_out, 1) f32
    # x_ref: VMEM (C_in, TM);                  o_ref: VMEM (C_out, TM)
    y = jnp.dot(w_ref[...], x_ref[...], preferred_element_type=jnp.float32)
    y = y + b_ref[...]
    o_ref[...] = jnp.maximum(y, 0.0).astype(o_ref.dtype)


# --------------------------------------------------------------------------
# Wrapper
# --------------------------------------------------------------------------

def outconv_forward(x_nchw, weight, bias):
    """y = ReLU(Conv2d_1x1(x)) with PyTorch NCHW semantics.

    x_nchw: (N, C_in, H, W); weight: (C_out, C_in, 1, 1); bias: (C_out,)
    returns (N, C_out, H, W) in x's dtype.
    """
    N, C_in, H, W = x_nchw.shape
    C_out = weight.shape[0]
    HW = H * W
    dtype_bytes = jnp.dtype(x_nchw.dtype).itemsize

    budget, vmem_limit = _vmem_budget()
    w2d = weight.reshape(C_out, C_in)
    b1d = bias.astype(jnp.float32)

    use_packed_vpu = (HW % 128 == 0) and (C_in <= 16) and (C_out <= 16)

    if use_packed_vpu:
        # ------- packed VPU path: spatial folded into (sublane, lane) -------
        R = HW // 128
        ts = _choose_ts(R, C_in, C_out, budget, dtype_bytes, N)
        x4d = x_nchw.reshape(N, C_in, R, 128)                # free reshape
        grid = (N, pl.cdiv(R, ts))
        kernel = _make_packed_vpu_kernel(C_in, C_out)
        in_specs = [
            pl.BlockSpec(memory_space=pltpu.MemorySpace.SMEM),   # weight scalars
            pl.BlockSpec(memory_space=pltpu.MemorySpace.SMEM),   # bias scalars
            pl.BlockSpec((None, C_in, ts, 128), lambda n, t: (n, 0, t, 0)),
        ]
        out_spec = pl.BlockSpec((None, C_out, ts, 128), lambda n, t: (n, 0, t, 0))
        out_shape = jax.ShapeDtypeStruct((N, C_out, R, 128), x_nchw.dtype)
        args = (w2d.astype(jnp.float32), b1d, x4d)
    else:
        # ------- MXU path: lane-dense spatial, native-dtype matmul -------
        tm = _choose_tm(HW, C_in, C_out, budget, dtype_bytes, N)
        x3d = x_nchw.reshape(N, C_in, HW)                     # free reshape
        grid = (N, pl.cdiv(HW, tm))
        kernel = _mxu_kernel
        in_specs = [
            pl.BlockSpec((C_out, C_in), lambda n, t: (0, 0)),
            pl.BlockSpec((C_out, 1), lambda n, t: (0, 0)),
            pl.BlockSpec((None, C_in, tm), lambda n, t: (n, 0, t)),
        ]
        out_spec = pl.BlockSpec((None, C_out, tm), lambda n, t: (n, 0, t))
        out_shape = jax.ShapeDtypeStruct((N, C_out, HW), x_nchw.dtype)
        args = (w2d.astype(x_nchw.dtype), b1d.reshape(C_out, 1), x3d)

    out = pl.pallas_call(
        kernel,
        out_shape=out_shape,
        grid_spec=pltpu.PrefetchScalarGridSpec(
            num_scalar_prefetch=0,
            grid=grid,
            in_specs=in_specs,
            out_specs=out_spec,
        ),
        compiler_params=pltpu.CompilerParams(
            dimension_semantics=("parallel", "parallel"),
            vmem_limit_bytes=vmem_limit,
        ),
    )(*args)

    return out.reshape(N, C_out, H, W)                       # free reshape


# --------------------------------------------------------------------------
# Self-test
# --------------------------------------------------------------------------

def _reference(x, weight, bias):
    C_out, C_in = weight.shape[0], weight.shape[1]
    y = jnp.einsum("nchw,oc->nohw", x.astype(jnp.float32),
                   weight.reshape(C_out, C_in).astype(jnp.float32))
    y = jnp.maximum(y + bias.reshape(1, C_out, 1, 1).astype(jnp.float32), 0.0)
    return y.astype(x.dtype)


def _check(key, n, c_in, c_out, h, w):
    kx, kw, kb = jax.random.split(key, 3)
    x = jax.random.normal(kx, (n, c_in, h, w), dtype=jnp.float32)
    weight = jax.random.normal(kw, (c_out, c_in, 1, 1), dtype=jnp.float32) * 0.5
    bias = jax.random.normal(kb, (c_out,), dtype=jnp.float32) * 0.1

    out = outconv_forward(x, weight, bias)
    jax.block_until_ready(out)

    ref = _reference(x, weight, bias)
    assert out.shape == (n, c_out, h, w)
    assert jnp.allclose(out, ref, atol=1e-5, rtol=1e-5), (n, c_in, c_out, h, w)


if __name__ == "__main__":
    key = jax.random.PRNGKey(0)
    k1, k2, k3 = jax.random.split(key, 3)

    # Small shapes consistent with OutConv(in_channels=4, out_channels=3):
    # packed-VPU path (HW = 256 is a multiple of 128, tiny channels).
    _check(k1, n=2, c_in=4, c_out=3, h=16, w=16)

    # Ragged spatial (HW = 130, not a multiple of 128) -> MXU path with
    # masked tail block.
    _check(k2, n=2, c_in=4, c_out=3, h=10, w=13)

    # Larger channel counts (> crossover) with HW < 128 -> MXU path,
    # full-extent spatial block.
    _check(k3, n=2, c_in=32, c_out=20, h=8, w=8)

    print("KERNEL_OK")
</pallas_src>

<mosaic_0001>
module attributes {stable_mosaic.version = 11 : i64} {
  func.func @kernel(%arg0: i32, %arg1: i32, %arg2: memref<3x4xf32, #tpu.memory_space<smem>>, %arg3: memref<3xf32, #tpu.memory_space<smem>>, %arg4: memref<1x4x2x128xf32, #tpu.memory_space<vmem>>, %arg5: memref<1x3x2x128xf32, #tpu.memory_space<vmem>>) attributes {dimension_semantics = [#tpu.dimension_semantics<parallel>, #tpu.dimension_semantics<parallel>], iteration_bounds = array<i64: 2, 1>, scalar_prefetch = 0 : i64, scratch_operands = 0 : i64, tpu.core_type = #tpu.core_type<tc>, window_params = [{transform_indices = @transform_0, window_bounds = array<i64: 3, 4>}, {transform_indices = @transform_1, window_bounds = array<i64: 3>}, {transform_indices = @transform_2, window_bounds = array<i64: 1, 4, 2, 128>}, {transform_indices = @transform_3, window_bounds = array<i64: 1, 3, 2, 128>}]} {
    %c0 = arith.constant 0 : index
    %c0_0 = arith.constant 0 : index
    %c0_1 = arith.constant 0 : index
    %c0_2 = arith.constant 0 : index
    %0 = vector.load %arg4[%c0, %c0_0, %c0_1, %c0_2] : memref<1x4x2x128xf32, #tpu.memory_space<vmem>>, vector<1x4x2x128xf32>
    %1 = vector.shape_cast %0 : vector<1x4x2x128xf32> to vector<4x2x128xf32>
    %2 = vector.extract_strided_slice %1 {offsets = [0, 0, 0], sizes = [1, 2, 128], strides = [1, 1, 1]} : vector<4x2x128xf32> to vector<1x2x128xf32>
    %3 = vector.shape_cast %2 : vector<1x2x128xf32> to vector<2x128xf32>
    %c0_3 = arith.constant 0 : index
    %c0_4 = arith.constant 0 : index
    %4 = memref.load %arg2[%c0_3, %c0_4] : memref<3x4xf32, #tpu.memory_space<smem>>
    %5 = vector.broadcast %4 : f32 to vector<2x128xf32>
    %6 = arith.mulf %3, %5 : vector<2x128xf32>
    %c0_5 = arith.constant 0 : index
    %7 = memref.load %arg3[%c0_5] : memref<3xf32, #tpu.memory_space<smem>>
    %8 = vector.broadcast %7 : f32 to vector<2x128xf32>
    %9 = arith.addf %6, %8 : vector<2x128xf32>
    %10 = vector.extract_strided_slice %1 {offsets = [1, 0, 0], sizes = [1, 2, 128], strides = [1, 1, 1]} : vector<4x2x128xf32> to vector<1x2x128xf32>
    %11 = vector.shape_cast %10 : vector<1x2x128xf32> to vector<2x128xf32>
    %c0_6 = arith.constant 0 : index
    %c1 = arith.constant 1 : index
    %12 = memref.load %arg2[%c0_6, %c1] : memref<3x4xf32, #tpu.memory_space<smem>>
    %13 = vector.broadcast %12 : f32 to vector<2x128xf32>
    %14 = arith.mulf %11, %13 : vector<2x128xf32>
    %15 = arith.addf %9, %14 : vector<2x128xf32>
    %16 = vector.extract_strided_slice %1 {offsets = [2, 0, 0], sizes = [1, 2, 128], strides = [1, 1, 1]} : vector<4x2x128xf32> to vector<1x2x128xf32>
    %17 = vector.shape_cast %16 : vector<1x2x128xf32> to vector<2x128xf32>
    %c0_7 = arith.constant 0 : index
    %c2 = arith.constant 2 : index
    %18 = memref.load %arg2[%c0_7, %c2] : memref<3x4xf32, #tpu.memory_space<smem>>
    %19 = vector.broadcast %18 : f32 to vector<2x128xf32>
    %20 = arith.mulf %17, %19 : vector<2x128xf32>
    %21 = arith.addf %15, %20 : vector<2x128xf32>
    %22 = vector.extract_strided_slice %1 {offsets = [3, 0, 0], sizes = [1, 2, 128], strides = [1, 1, 1]} : vector<4x2x128xf32> to vector<1x2x128xf32>
    %23 = vector.shape_cast %22 : vector<1x2x128xf32> to vector<2x128xf32>
    %c0_8 = arith.constant 0 : index
    %c3 = arith.constant 3 : index
    %24 = memref.load %arg2[%c0_8, %c3] : memref<3x4xf32, #tpu.memory_space<smem>>
    %25 = vector.broadcast %24 : f32 to vector<2x128xf32>
    %26 = arith.mulf %23, %25 : vector<2x128xf32>
    %27 = arith.addf %21, %26 : vector<2x128xf32>
    %cst = arith.constant 0.000000e+00 : f32
    %28 = vector.broadcast %cst : f32 to vector<2x128xf32>
    %29 = arith.maximumf %27, %28 : vector<2x128xf32>
    %c0_9 = arith.constant 0 : index
    %c0_10 = arith.constant 0 : index
    %c0_11 = arith.constant 0 : index
    %c0_12 = arith.constant 0 : index
    %30 = vector.load %arg5[%c0_9, %c0_10, %c0_11, %c0_12] : memref<1x3x2x128xf32, #tpu.memory_space<vmem>>, vector<1x1x2x128xf32>
    %31 = vector.shape_cast %30 : vector<1x1x2x128xf32> to vector<2x128xf32>
    %32 = vector.shape_cast %29 : vector<2x128xf32> to vector<1x1x2x128xf32>
    tpu.vector_store %arg5[%c0_9, %c0_10, %c0_11, %c0_12], %32 {strides = array<i32>} : memref<1x3x2x128xf32, #tpu.memory_space<vmem>>, vector<1x1x2x128xf32>,
    %33 = vector.extract_strided_slice %1 {offsets = [0, 0, 0], sizes = [1, 2, 128], strides = [1, 1, 1]} : vector<4x2x128xf32> to vector<1x2x128xf32>
    %34 = vector.shape_cast %33 : vector<1x2x128xf32> to vector<2x128xf32>
    %c1_13 = arith.constant 1 : index
    %c0_14 = arith.constant 0 : index
    %35 = memref.load %arg2[%c1_13, %c0_14] : memref<3x4xf32, #tpu.memory_space<smem>>
    %36 = vector.broadcast %35 : f32 to vector<2x128xf32>
    %37 = arith.mulf %34, %36 : vector<2x128xf32>
    %c1_15 = arith.constant 1 : index
    %38 = memref.load %arg3[%c1_15] : memref<3xf32, #tpu.memory_space<smem>>
    %39 = vector.broadcast %38 : f32 to vector<2x128xf32>
    %40 = arith.addf %37, %39 : vector<2x128xf32>
    %41 = vector.extract_strided_slice %1 {offsets = [1, 0, 0], sizes = [1, 2, 128], strides = [1, 1, 1]} : vector<4x2x128xf32> to vector<1x2x128xf32>
    %42 = vector.shape_cast %41 : vector<1x2x128xf32> to vector<2x128xf32>
    %c1_16 = arith.constant 1 : index
    %c1_17 = arith.constant 1 : index
    %43 = memref.load %arg2[%c1_16, %c1_17] : memref<3x4xf32, #tpu.memory_space<smem>>
    %44 = vector.broadcast %43 : f32 to vector<2x128xf32>
    %45 = arith.mulf %42, %44 : vector<2x128xf32>
    %46 = arith.addf %40, %45 : vector<2x128xf32>
    %47 = vector.extract_strided_slice %1 {offsets = [2, 0, 0], sizes = [1, 2, 128], strides = [1, 1, 1]} : vector<4x2x128xf32> to vector<1x2x128xf32>
    %48 = vector.shape_cast %47 : vector<1x2x128xf32> to vector<2x128xf32>
    %c1_18 = arith.constant 1 : index
    %c2_19 = arith.constant 2 : index
    %49 = memref.load %arg2[%c1_18, %c2_19] : memref<3x4xf32, #tpu.memory_space<smem>>
    %50 = vector.broadcast %49 : f32 to vector<2x128xf32>
    %51 = arith.mulf %48, %50 : vector<2x128xf32>
    %52 = arith.addf %46, %51 : vector<2x128xf32>
    %53 = vector.extract_strided_slice %1 {offsets = [3, 0, 0], sizes = [1, 2, 128], strides = [1, 1, 1]} : vector<4x2x128xf32> to vector<1x2x128xf32>
    %54 = vector.shape_cast %53 : vector<1x2x128xf32> to vector<2x128xf32>
    %c1_20 = arith.constant 1 : index
    %c3_21 = arith.constant 3 : index
    %55 = memref.load %arg2[%c1_20, %c3_21] : memref<3x4xf32, #tpu.memory_space<smem>>
    %56 = vector.broadcast %55 : f32 to vector<2x128xf32>
    %57 = arith.mulf %54, %56 : vector<2x128xf32>
    %58 = arith.addf %52, %57 : vector<2x128xf32>
    %cst_22 = arith.constant 0.000000e+00 : f32
    %59 = vector.broadcast %cst_22 : f32 to vector<2x128xf32>
    %60 = arith.maximumf %58, %59 : vector<2x128xf32>
    %c0_23 = arith.constant 0 : index
    %c1_24 = arith.constant 1 : index
    %c0_25 = arith.constant 0 : index
    %c0_26 = arith.constant 0 : index
    %61 = vector.load %arg5[%c0_23, %c1_24, %c0_25, %c0_26] : memref<1x3x2x128xf32, #tpu.memory_space<vmem>>, vector<1x1x2x128xf32>
    %62 = vector.shape_cast %61 : vector<1x1x2x128xf32> to vector<2x128xf32>
    %63 = vector.shape_cast %60 : vector<2x128xf32> to vector<1x1x2x128xf32>
    tpu.vector_store %arg5[%c0_23, %c1_24, %c0_25, %c0_26], %63 {strides = array<i32>} : memref<1x3x2x128xf32, #tpu.memory_space<vmem>>, vector<1x1x2x128xf32>,
    %64 = vector.extract_strided_slice %1 {offsets = [0, 0, 0], sizes = [1, 2, 128], strides = [1, 1, 1]} : vector<4x2x128xf32> to vector<1x2x128xf32>
    %65 = vector.shape_cast %64 : vector<1x2x128xf32> to vector<2x128xf32>
    %c2_27 = arith.constant 2 : index
    %c0_28 = arith.constant 0 : index
    %66 = memref.load %arg2[%c2_27, %c0_28] : memref<3x4xf32, #tpu.memory_space<smem>>
    %67 = vector.broadcast %66 : f32 to vector<2x128xf32>
    %68 = arith.mulf %65, %67 : vector<2x128xf32>
    %c2_29 = arith.constant 2 : index
    %69 = memref.load %arg3[%c2_29] : memref<3xf32, #tpu.memory_space<smem>>
    %70 = vector.broadcast %69 : f32 to vector<2x128xf32>
    %71 = arith.addf %68, %70 : vector<2x128xf32>
    %72 = vector.extract_strided_slice %1 {offsets = [1, 0, 0], sizes = [1, 2, 128], strides = [1, 1, 1]} : vector<4x2x128xf32> to vector<1x2x128xf32>
    %73 = vector.shape_cast %72 : vector<1x2x128xf32> to vector<2x128xf32>
    %c2_30 = arith.constant 2 : index
    %c1_31 = arith.constant 1 : index
    %74 = memref.load %arg2[%c2_30, %c1_31] : memref<3x4xf32, #tpu.memory_space<smem>>
    %75 = vector.broadcast %74 : f32 to vector<2x128xf32>
    %76 = arith.mulf %73, %75 : vector<2x128xf32>
    %77 = arith.addf %71, %76 : vector<2x128xf32>
    %78 = vector.extract_strided_slice %1 {offsets = [2, 0, 0], sizes = [1, 2, 128], strides = [1, 1, 1]} : vector<4x2x128xf32> to vector<1x2x128xf32>
    %79 = vector.shape_cast %78 : vector<1x2x128xf32> to vector<2x128xf32>
    %c2_32 = arith.constant 2 : index
    %c2_33 = arith.constant 2 : index
    %80 = memref.load %arg2[%c2_32, %c2_33] : memref<3x4xf32, #tpu.memory_space<smem>>
    %81 = vector.broadcast %80 : f32 to vector<2x128xf32>
    %82 = arith.mulf %79, %81 : vector<2x128xf32>
    %83 = arith.addf %77, %82 : vector<2x128xf32>
    %84 = vector.extract_strided_slice %1 {offsets = [3, 0, 0], sizes = [1, 2, 128], strides = [1, 1, 1]} : vector<4x2x128xf32> to vector<1x2x128xf32>
    %85 = vector.shape_cast %84 : vector<1x2x128xf32> to vector<2x128xf32>
    %c2_34 = arith.constant 2 : index
    %c3_35 = arith.constant 3 : index
    %86 = memref.load %arg2[%c2_34, %c3_35] : memref<3x4xf32, #tpu.memory_space<smem>>
    %87 = vector.broadcast %86 : f32 to vector<2x128xf32>
    %88 = arith.mulf %85, %87 : vector<2x128xf32>
    %89 = arith.addf %83, %88 : vector<2x128xf32>
    %cst_36 = arith.constant 0.000000e+00 : f32
    %90 = vector.broadcast %cst_36 : f32 to vector<2x128xf32>
    %91 = arith.maximumf %89, %90 : vector<2x128xf32>
    %c0_37 = arith.constant 0 : index
    %c2_38 = arith.constant 2 : index
    %c0_39 = arith.constant 0 : index
    %c0_40 = arith.constant 0 : index
    %92 = vector.load %arg5[%c0_37, %c2_38, %c0_39, %c0_40] : memref<1x3x2x128xf32, #tpu.memory_space<vmem>>, vector<1x1x2x128xf32>
    %93 = vector.shape_cast %92 : vector<1x1x2x128xf32> to vector<2x128xf32>
    %94 = vector.shape_cast %91 : vector<2x128xf32> to vector<1x1x2x128xf32>
    tpu.vector_store %arg5[%c0_37, %c2_38, %c0_39, %c0_40], %94 {strides = array<i32>} : memref<1x3x2x128xf32, #tpu.memory_space<vmem>>, vector<1x1x2x128xf32>,
    return
  }
  func.func @transform_0(%arg0: i32, %arg1: i32) -> (i32, i32) {
    %c0_i32 = arith.constant 0 : i32
    %c0_i32_0 = arith.constant 0 : i32
    %c0_i32_1 = arith.constant 0 : i32
    return %c0_i32, %c0_i32_0 : i32, i32
  }
  func.func @transform_1(%arg0: i32, %arg1: i32) -> i32 {
    %c0_i32 = arith.constant 0 : i32
    %c0_i32_0 = arith.constant 0 : i32
    return %c0_i32 : i32
  }
  func.func @transform_2(%arg0: i32, %arg1: i32) -> (i32, i32, i32, i32) {
    %c0_i32 = arith.constant 0 : i32
    %c0_i32_0 = arith.constant 0 : i32
    %c0_i32_1 = arith.constant 0 : i32
    return %arg0, %c0_i32, %arg1, %c0_i32_0 : i32, i32, i32, i32
  }
  func.func @transform_3(%arg0: i32, %arg1: i32) -> (i32, i32, i32, i32) {
    %c0_i32 = arith.constant 0 : i32
    %c0_i32_0 = arith.constant 0 : i32
    %c0_i32_1 = arith.constant 0 : i32
    return %arg0, %c0_i32, %arg1, %c0_i32_0 : i32, i32, i32, i32
  }
}

</mosaic_0001>

<bundles_post_ra>
// kernel: tpu_custom_call.1
= control target key start
LH: loop header
LB: loop body
LE: loop exit
PB: predicated region body
PF: predicated region fallthrough
CT: control target
= control target key end

     0   :  { %s883_s0 = inlined_call_operand.hbm [shape: f32[3,4], index: 0, kind: input, shape index: {}]   ;;  %s884_s1 = inlined_call_operand.hbm [shape: f32[3], index: 1, kind: input, shape index: {}]   ;;  %s885_s2 = inlined_call_operand.hbm [shape: f32[2,4,2,128], index: 2, kind: input, shape index: {}]   ;;  %s886_s3 = inlined_call_operand.hbm [shape: f32[2,3,2,128], index: 3, kind: output, shape index: {}]  }
   0x1   :  { %887 = sst [smem:[#allocation14_spill]] %s883_s0 }
   0x2   :  { %8 = vsyncpa [#allocation5], 0 }
   0x3   :  { %9 = vsyncpa [#allocation7], 0 }
   0x4   :  { %10 = vsyncpa [#allocation3], 0 }
   0x5   :  { %12 = vsyncpa [#allocation3 + $0x1], 0 }
   0x6   :  { %13 = vsyncpa [#allocation4], 0 }
   0x7   :  { %15 = vsyncpa [#allocation4 + $0x1], 0  ;;  %s724_s12 = smov 0   ;;  %s726_s13 = smov 0  }
   0x8   :  { %s728_s14 = smov 0   ;;  %s730_s15 = smov 0  }
   0x9   :  { %s732_s16 = smov 0   ;;  %s734_s17 = smov 0  }
   0xa LB: > { %s425_s18 = sadd.s32 4294967295, %s696_s17   ;;  %s426_s19 = sadd.s32 4294967294, %s696_s17   ;;  %s696_s17 = sphi %s734_s17, %s21_s17   ;;  %s692_s16 = sphi %s732_s16, %s900_s16   ;;  %s688_s15 = sphi %s730_s15, %s899_s15   ;;  %s684_s14 = sphi %s728_s14, %s898_s14   ;;  %s680_s13 = sphi %s726_s13, %s897_s13   ;;  %s676_s12 = sphi %s724_s12, %s896_s12  }
   0xb   : > { %s84_s20 = sadd.s32 1, %s684_s14  ;;  %p91_p0 = scmp.ne.s32.totalorder %s684_s14, %s680_s13 }
   0xc   : > { %p92_p1 = scmp.eq.s32.totalorder %s696_s17, 0  ;;  %p97_p2 = scmp.ne.s32.totalorder %s680_s13, %s676_s12 }
   0xd   : > { %p762_p3 = scmp.eq.s32.totalorder %s425_s18, 0  ;;  %p123_p4 = scmp.eq.s32.totalorder %s425_s18, 1 }
   0xe   : > { %p766_p5 = por %p92_p1, %p91_p0  ;;  %p129_p6 = scmp.eq.s32.totalorder %s426_s19, 1 }
   0xf   : > { %p772_p7 = por %p762_p3, %p97_p2  ;;  %p776_p8 = por %p123_p4, %p91_p0 }
  0x10   : > { %p780_p9 = por %p129_p6, %p97_p2  ;;  %p427_p10 = scmp.ge.s32.totalorder %s696_s17, 1 }
  0x11   : > { %p136_p11 = scmp.lt.s32.totalorder %s696_s17, 3  ;;  %s893_s0 = sld [smem:[#allocation14_spill]] }
  0x12   : > { %p430_p13 = scmp.ge.s32.totalorder %s696_s17, 2  ;;  %p488_p0 = scmp.lt.s32.totalorder %s696_s17, 2 }
  0x13   : > { %p789_p12 = pnand %p427_p10, %p136_p11  ;;  %s158_s5 = sshll.u32 %s884_s1, 4  ;;  %s159_s5 = int_to_ptr.hbm [resolvable:$true] %s158_s5 }
  0x14   : > { %p802_p2 = pnand %p488_p0, %p766_p5  ;;  %s698_s7 = smov [#allocation2]  }
  0x15   : > { %p471_p1 = pneg %p789_p12  ;;  %s699_s8 = smov [#allocation6]  }
  0x16   : > { %s33_s9 = sadd.s32 1, %s692_s16  ;;  %s169_s10 = sand.u32 1, %s684_s14  }
  0x17   : > { %s148_s28 = sshll.u32 %s893_s0, 4  ;;  %p472_p4 = pnand %p471_p1, %p762_p3  ;;  %s149_s28 = int_to_ptr.hbm [resolvable:$true] %s148_s28 }
  0x18   : > { %p35_p6 = scmp.ge.s32.totalorder %s33_s9, 2  ;;  %s431_s11 = sshll.u32 %s169_s10, 3 }
  0x19   : > { %474 = dma.hbm_to_smem (!%p472_p4), %s149_s28, 64, %s698_s7, [#allocation5]  }
  0x1a   : > { %477 = dma.hbm_to_smem (!%p472_p4), %s159_s5, 16, %s699_s8, [#allocation7]  }
  0x1b   : > { %s456_s18 = sshll.u32 %s692_s16, 3  ;;  %s902_s9 = smov (%p35_p6, %s33_s9), 0 }
  0x1c   : > { %s179_s26 = scalar_lea.hbm %s885_s2, %s456_s18  ;;  %s79_s27 = ssub.s32 %s692_s16, %s902_s9 }
  0x1d   : > { %s180_s30 = sshll.u32 %s179_s26, 4  ;;  %p82_p5 = scmp.eq.s32.totalorder %s79_s27, 0  ;;  %s181_s30 = int_to_ptr.hbm [resolvable:$true] %s180_s30 }
  0x1e   : > { %s173_s28 = scalar_lea.vmem [#allocation8], %s431_s11  ;;  %s170_s7 = scalar_lea.sflag [#allocation3], %s169_s10 }
  0x1f   : > { %s182_s4 = sshll.u32 %s173_s28, 4  ;;  %s700_s8 = smov 32   ;;  %s183_s4 = int_to_ptr.vmem [resolvable:$true] %s182_s4 }
  0x20   : > { %s821_s5 = scalar_select %p82_p5, %s684_s14, %s84_s20  }
  0x21   : > { %s701_s0 = smov 2   ;;  %194 = sbr.rel (%p789_p12) target bundleno = 80 (0x50), region = 32 }
  0x22   : > { %481 = dma.hbm_to_vmem [thread:$0]  (!%p802_p2), %s181_s30, 128, %s183_s4, %s170_s7, %s700_s8, %s700_s8, %s701_s0  }
  0x26   : > { %659 = dma.done.wait (%p762_p3), [#allocation5], 64  }
  0x27   : > { %661 = vsyncadd (%p762_p3), [#allocation5], 4294967232 }
  0x28   : > { %663 = dma.done.wait (%p762_p3), [#allocation7], 16  }
  0x29   : > { %665 = vsyncadd (%p762_p3), [#allocation7], 4294967280  ;;  %s836_s20 = sand.u32 1, %s680_s13  }
  0x2a   : > { %s437_s0 = sshll.u32 %s836_s20, 3  ;;  %s207_s29 = scalar_lea.sflag [#allocation3], %s836_s20 }
  0x2b   : > { %s210_s6 = scalar_lea.vmem [#allocation8], %s437_s0 }
  0x2c   : > { %667 = dma.done.wait (%p772_p7), %s207_s29, 128  }
  0x2d   : > { %669 = vsyncadd (%p772_p7), %s207_s29, 4294967168 }
  0x2e   : > { %216 = sfence }
  0x2f   : > { %s239_s10 = sld [smem:[#allocation2]]  ;;  %v235_v0 = vld [vmem:[%s210_s6] sm:$0x3]  ;;  %v236_v1 = vld [vmem:[%s210_s6 + $0x2] sm:$0x3]  ;;  %s457_s7 = smul.u32 6, %s836_s20 }
  0x30   : > { %s242_s11 = sld [smem:[#allocation6]]  ;;  %v237_v3 = vld [vmem:[%s210_s6 + $0x4] sm:$0x3]  ;;  %v238_v6 = vld [vmem:[%s210_s6 + $0x6] sm:$0x3]  ;;  %s458_s6 = smul.u32 6, %s688_s15 }
  0x31   : > { %s438_s18 = sld [smem:[#allocation2 + $0x1]] }
  0x32   : > { %s439_s21 = sld [smem:[#allocation2 + $0x2]] }
  0x33   : > { %s440_s19 = sld [smem:[#allocation2 + $0x3]] }
  0x34   : > { %s441_s22 = sld [smem:[#allocation2 + $0x80]] }
  0x35   : > { %v240_v2 = vstv %s239_s10  ;;  %s442_s26 = sld [smem:[#allocation6 + $0x1]]  ;;  %s234_s10 = scalar_lea.vmem [#allocation9], %s457_s7 }
  0x36   : > { %v241_v4 = vmul.f32 %v240_v2, %v235_v0  ;;  %v243_v5 = vstv %s242_s11  ;;  %s443_s27 = sld [smem:[#allocation2 + $0x81]]  ;;  %s315_s15 = sshll.u32 %s234_s10, 4  ;;  %s316_s15 = int_to_ptr.vmem [resolvable:$true] %s315_s15 }
  0x37   : > { %v246_v7 = vstv %s438_s18  ;;  %s444_s23 = sld [smem:[#allocation2 + $0x82]] }
  0x38   : > { %v244_v8 = vadd.f32 %v243_v5, %v241_v4  ;;  %v247_v9 = vmul.f32 %v246_v7, %v236_v1  ;;  %v250_v10 = vstv %s439_s21  ;;  %s445_s30 = sld [smem:[#allocation2 + $0x83]]  ;;  %s314_s21 = scalar_lea.hbm %s886_s3, %s458_s6 }
  0x39   : > { %v251_v11 = vmul.f32 %v250_v10, %v237_v3  ;;  %v254_v12 = vstv %s440_s19  ;;  %s447_s28 = sld [smem:[#allocation2 + $0x100]]  ;;  %s317_s19 = sshll.u32 %s314_s21, 4  ;;  %s318_s19 = int_to_ptr.hbm [resolvable:$true] %s317_s19 }
  0x3a   : > { %v248_v13 = vadd.f32 %v247_v9, %v244_v8  ;;  %v255_v14 = vmul.f32 %v254_v12, %v238_v6  ;;  %v260_v15 = vstv %s441_s22  ;;  %s448_s4 = sld [smem:[#allocation6 + $0x2]]  ;;  %s302_s22 = scalar_lea.sflag [#allocation4], %s836_s20 }
  0x3b   : > { %v261_v16 = vmul.f32 %v260_v15, %v235_v0  ;;  %v263_v17 = vstv %s442_s26  ;;  %s449_s8 = sld [smem:[#allocation2 + $0x101]]  ;;  %s620_s26 = sshra.s32 %s318_s19, 4  ;;  %s621_s26 = int_to_ptr.hbm [resolvable:$true] %s620_s26 }
  0x3c   : > { %v252_v18 = vadd.f32 %v251_v11, %v248_v13  ;;  %v266_v19 = vstv %s443_s27  ;;  %s450_s0 = sld [smem:[#allocation2 + $0x102]]  ;;  %s622_s27 = scalar_lea.hbm %s621_s26, 6 }
  0x3d   : > { %v264_v20 = vadd.f32 %v263_v17, %v261_v16  ;;  %v267_v21 = vmul.f32 %v266_v19, %v236_v1  ;;  %v270_v22 = vstv %s444_s23  ;;  %s451_s29 = sld [smem:[#allocation2 + $0x103]]  ;;  %p623_p3 = scmp.ne.s32.totalorder %s621_s26, %s622_s27 }
  0x3e   : > { %v256_v23 = vadd.f32 %v255_v14, %v252_v18  ;;  %v271_v24 = vmul.f32 %v270_v22, %v237_v3  ;;  %v274_v25 = vstv %s445_s30  ;;  %p627_p11 = scmp.lt.s32.totalorder %s621_s26, %s886_s3 }
  0x3f   : > { %v268_v26 = vadd.f32 %v267_v21, %v264_v20  ;;  %v275_v27 = vmul.f32 %v274_v25, %v238_v6  ;;  %v281_v28 = vstv %s447_s28  ;;  %p624_p7 = pnand %p623_p3, %p776_p8  ;;  %s626_s28 = scalar_lea.hbm %s886_s3, 12 }
  0x40   : > { %v257_v29 = vmax.f32 %v256_v23, 0.0  ;;  %v282_v30 = vmul.f32 %v281_v28, %v235_v0  ;;  %v284_v31 = vstv %s448_s4  ;;  %p628_p12 = scmp.lt.s32.totalorder %s626_s28, %s622_s27 }
  0x41   : > { %v272_v32 = vadd.f32 %v271_v24, %v268_v26  ;;  %v287_v33 = vstv %s449_s8  ;;  %p625_p10 = pneg %p624_p7 }
  0x42   : > { %258 = vst [vmem:[%s234_s10] sm:$0x3] %v257_v29  ;;  %v285_v34 = vadd.f32 %v284_v31, %v282_v30  ;;  %v288_v35 = vmul.f32 %v287_v33, %v236_v1  ;;  %v291_v36 = vstv %s450_s0  ;;  %p629_p0 = por %p628_p12, %p627_p11 }
  0x43   : > { %v276_v37 = vadd.f32 %v275_v27, %v272_v32  ;;  %v292_v38 = vmul.f32 %v291_v36, %v237_v3  ;;  %v295_v39 = vstv %s451_s29 }
  0x44   : > { %v289_v40 = vadd.f32 %v288_v35, %v285_v34  ;;  %v296_v41 = vmul.f32 %v295_v39, %v238_v6  ;;  %p630_p1 = pnand %p629_p0, %p625_p10 }
  0x45   : > { %v277_v42 = vmax.f32 %v276_v37, 0.0 }
  0x46   : > { %v293_v43 = vadd.f32 %v292_v38, %v289_v40 }
  0x47   : > { %446 = vst [vmem:[%s234_s10 + $0x2] sm:$0x3] %v277_v42 }
  0x48   : > { %v297_v44 = vadd.f32 %v296_v41, %v293_v43 }
  0x4a   : > { %v298_v45 = vmax.f32 %v297_v44, 0.0 }
  0x4c   : > { %452 = vst [vmem:[%s234_s10 + $0x4] sm:$0x3] %v298_v45 }
  0x4d   : > { %633 = shalt.err (!%p630_p1)
}
  0x4e   : > { %s702_s20 = smov 32   ;;  %s703_s8 = smov 2  }
  0x4f   : > { %469 = dma.vmem_to_hbm [thread:$0]  (%p776_p8), %s316_s15, 96, %s318_s19, %s302_s22, %s702_s20, %s702_s20, %s703_s8  }
  0x50 PF: > { %s332_s0 = sand.u32 1, %s676_s12   ;;  %p483_p2 = pnand %p430_p13, %p780_p9 }
  0x51   : > { %s333_s29 = scalar_lea.sflag [#allocation4], %s332_s0 }
  0x52   : > { %p484_p4 = pneg %p483_p2 }
  0x54   : > { %671 = dma.done.wait (%p484_p4), %s333_s29, 96  }
  0x55   : > { %673 = vsyncadd (%p484_p4), %s333_s29, 4294967200  ;;  %s21_s17 = sadd.s32 1, %s696_s17   ;;  %s896_s12 = smov %s680_s13 }
  0x56   : > { %p18_p6 = scmp.ge.s32.totalorder %s21_s17, 4   ;;  %s897_s13 = smov %s684_s14 }
  0x57   : > { %s898_s14 = smov %s821_s5  ;;  %s899_s15 = smov %s692_s16 }
  0x58   : > { %s900_s16 = smov %s902_s9  ;;  %20 = sbr.rel (!%p18_p6) target bundleno = 10 (0xa), region = 88 }
  0x5d   :  { %339 = vsyncpa [#allocation3], 1 }
  0x5e   :  { %341 = vsyncpa [#allocation3 + $0x1], 1 }
  0x5f   :  { %342 = vsyncpa [#allocation4], 1 }
  0x60   :  { %344 = vsyncpa [#allocation4 + $0x1], 1 }
  0x61   :  { %345 = vsyncpa [#allocation5], 1 }
  0x62   :  { %347 = vsyncpa [#allocation5 + $0x1], 1 }
  0x63   :  { %348 = vsyncpa [#allocation7], 1 }

</bundles_post_ra>
